<compile_context>
chip_gen: v7x
topology: tpu7x:2x2x1
jax: 0.10.0
libtpu: 0.0.40
codegen_flags: <defaults>
</compile_context>

<pallas_src>
import jax
import jax.numpy as jnp
from jax.experimental import pallas as pl
from jax.experimental.pallas import tpu as pltpu


_TARGET_TILE_BYTES = 2 << 20   # ~2 MiB per tile buffer (in+out double-buffered ~= 8 MiB VMEM)
_MIN_SPLIT_BYTES = 512 << 10   # above this, force >= 2 grid blocks (v7x: 2 TensorCores)
_SMALL_INPUT_BYTES = 128 << 10  # below this, a pallas_call costs more than it saves


def _round_up(n: int, m: int) -> int:
    return ((n + m - 1) // m) * m


def _sublane_min(dtype) -> int:
    # Packed-sublane minimum tile rows: 8 for 32-bit, 16 for bf16, 32 for int8/fp8.
    itemsize = jnp.dtype(dtype).itemsize
    return max(8, 32 // itemsize)


# ---------------------------------------------------------------------------
# Kernels
# ---------------------------------------------------------------------------

def _sigmoid_kernel(x_ref, o_ref):
    # Pure elementwise sigmoid (exp on EUP); memory-bound.
    o_ref[...] = jax.nn.sigmoid(x_ref[...]).astype(o_ref.dtype)


def _sigmoid_keep_col0_kernel(x_ref, o_ref):
    # Single blended store: column 0 of the *full* array passes through raw,
    # everything else gets sigmoid.  The compare+select rides in otherwise-idle
    # VALU slots; there is exactly one unmasked vst per vreg (no WAW pair).
    x = x_ref[...]
    sig = jax.nn.sigmoid(x)
    local_col0 = jax.lax.broadcasted_iota(jnp.int32, x.shape, dimension=1) == 0
    is_global_col0 = jnp.logical_and(local_col0, pl.program_id(1) == 0)
    o_ref[...] = jnp.where(is_global_col0, x, sig).astype(o_ref.dtype)


# ---------------------------------------------------------------------------
# Wrapper
# ---------------------------------------------------------------------------

def _choose_tiles(batch: int, frames: int, itemsize: int, smin: int):
    """Pick (tile_rows, tile_cols) honoring the (8,128) rule with no padding."""
    # Column tiling: keep the full `frames` dim unless it is so wide that even
    # `smin` rows would blow the per-tile byte budget.
    if frames * itemsize * smin <= _TARGET_TILE_BYTES:
        tile_cols = frames                       # == full dim, (8,128) rule OK
    else:
        tile_cols = max(128, (_TARGET_TILE_BYTES // (smin * itemsize)) // 128 * 128)
        tile_cols = min(tile_cols, _round_up(frames, 128))

    # Row tiling: as many rows as fit the budget, rounded to the sublane min.
    bytes_per_row = tile_cols * itemsize
    budget_rows = max(smin, (_TARGET_TILE_BYTES // bytes_per_row) // smin * smin)
    tile_rows = batch if batch <= budget_rows else budget_rows

    # v7x: make sure a non-trivial input yields >= 2 grid blocks so both
    # TensorCores get work (no effect on v5e/v6e single-TC parts).
    total_bytes = batch * frames * itemsize
    if (total_bytes >= _MIN_SPLIT_BYTES
            and pl.cdiv(batch, tile_rows) < 2
            and pl.cdiv(frames, tile_cols) < 2):
        half_rows = _round_up(pl.cdiv(batch, 2), smin)
        if half_rows < batch:
            tile_rows = half_rows
    return tile_rows, tile_cols


def _pallas_sigmoid_2d(x: jax.Array, keep_col0: bool) -> jax.Array:
    batch, frames = x.shape
    itemsize = jnp.dtype(x.dtype).itemsize
    smin = _sublane_min(x.dtype)
    tile_rows, tile_cols = _choose_tiles(batch, frames, itemsize, smin)

    grid = (pl.cdiv(batch, tile_rows), pl.cdiv(frames, tile_cols))
    n = batch * frames
    cost = pl.CostEstimate(
        flops=2 * n,
        transcendentals=n,
        bytes_accessed=2 * n * itemsize,
    )
    kernel = _sigmoid_keep_col0_kernel if keep_col0 else _sigmoid_kernel

    return pl.pallas_call(
        kernel,
        out_shape=jax.ShapeDtypeStruct((batch, frames), x.dtype),
        grid_spec=pltpu.PrefetchScalarGridSpec(
            num_scalar_prefetch=0,
            grid=grid,
            in_specs=[pl.BlockSpec((tile_rows, tile_cols), lambda i, j: (i, j))],
            out_specs=pl.BlockSpec((tile_rows, tile_cols), lambda i, j: (i, j)),
        ),
        compiler_params=pltpu.CompilerParams(
            dimension_semantics=("parallel", "parallel"),
        ),
        cost_estimate=cost,
    )(x)


def sigmoid_outputs(x: jax.Array,
                    predict_number_of_frames: bool = False,
                    *,
                    force_pallas: bool = False) -> jax.Array:
    """Pallas equivalent of Encoder.sigmoid_outputs. x: (batch, frames)."""
    assert x.ndim == 2, "expected (batch, frames)"
    batch, frames = x.shape
    itemsize = jnp.dtype(x.dtype).itemsize

    # Tiny logits: a pallas_call launch costs more than fused XLA sigmoid.
    if not force_pallas and batch * frames * itemsize < _SMALL_INPUT_BYTES:
        sig = jax.nn.sigmoid(x)
        if predict_number_of_frames:
            return jnp.concatenate([x[:, :1], sig[:, 1:]], axis=-1)
        return sig

    return _pallas_sigmoid_2d(x, keep_col0=predict_number_of_frames)


class PallasEncoder:
    """Minimal stand-in for the abstract torch Encoder (sigmoid_outputs only)."""

    def __init__(self, predict_number_of_frames: bool = False):
        self.predict_number_of_frames = predict_number_of_frames

    def sigmoid_outputs(self, x: jax.Array, *, force_pallas: bool = False) -> jax.Array:
        return sigmoid_outputs(x, self.predict_number_of_frames,
                               force_pallas=force_pallas)


# ---------------------------------------------------------------------------
# Self-test
# ---------------------------------------------------------------------------

def _reference(x, predict_number_of_frames):
    sig = jax.nn.sigmoid(x)
    if predict_number_of_frames:
        return jnp.concatenate([x[:, :1], sig[:, 1:]], axis=-1)
    return sig


if __name__ == "__main__":
    key = jax.random.PRNGKey(0)
    ok = True

    # (shape, force_pallas): small shape forced through the kernel, a tiny one
    # through the fused-XLA fallback, and a modest multi-tile shape through the
    # natural dispatch (exercises the >=2-block row split + remainder masking).
    cases = [
        ((8, 256), True),
        ((4, 8), False),
        ((200, 1000), False),
    ]
    for shape, force in cases:
        key, sub = jax.random.split(key)
        x = jax.random.normal(sub, shape, dtype=jnp.float32) * 3.0
        for flag in (False, True):
            enc = PallasEncoder(predict_number_of_frames=flag)
            out = jax.block_until_ready(enc.sigmoid_outputs(x, force_pallas=force))
            ref = _reference(x, flag)
            ok &= bool(jnp.allclose(out, ref, atol=1e-6, rtol=1e-6))

    print("KERNEL_OK" if ok else "KERNEL_MISMATCH")
</pallas_src>

<mosaic_0001>
module attributes {stable_mosaic.version = 11 : i64} {
  func.func @_sigmoid_kernel(%arg0: i32, %arg1: i32, %arg2: memref<8x256xf32, #tpu.memory_space<vmem>>, %arg3: memref<8x256xf32, #tpu.memory_space<vmem>>) attributes {dimension_semantics = [#tpu.dimension_semantics<parallel>, #tpu.dimension_semantics<parallel>], iteration_bounds = array<i64: 1, 1>, scalar_prefetch = 0 : i64, scratch_operands = 0 : i64, tpu.core_type = #tpu.core_type<tc>, window_params = [{transform_indices = @transform_0, window_bounds = array<i64: 8, 256>}, {transform_indices = @transform_1, window_bounds = array<i64: 8, 256>}]} {
    %c0 = arith.constant 0 : index
    %c0_0 = arith.constant 0 : index
    %0 = vector.load %arg2[%c0, %c0_0] : memref<8x256xf32, #tpu.memory_space<vmem>>, vector<8x256xf32>
    %1 = arith.negf %0 : vector<8x256xf32>
    %2 = math.exp %1 : vector<8x256xf32>
    %cst = arith.constant 1.000000e+00 : f32
    %3 = vector.broadcast %cst : f32 to vector<8x256xf32>
    %4 = arith.addf %3, %2 : vector<8x256xf32>
    %5 = arith.divf %3, %4 : vector<8x256xf32>
    %c0_1 = arith.constant 0 : index
    %c0_2 = arith.constant 0 : index
    %6 = vector.load %arg3[%c0_1, %c0_2] : memref<8x256xf32, #tpu.memory_space<vmem>>, vector<8x256xf32>
    tpu.vector_store %arg3[%c0_1, %c0_2], %5 {strides = array<i32>} : memref<8x256xf32, #tpu.memory_space<vmem>>, vector<8x256xf32>,
    return
  }
  func.func @transform_0(%arg0: i32, %arg1: i32) -> (i32, i32) {
    %c0_i32 = arith.constant 0 : i32
    return %arg0, %arg1 : i32, i32
  }
  func.func @transform_1(%arg0: i32, %arg1: i32) -> (i32, i32) {
    %c0_i32 = arith.constant 0 : i32
    return %arg0, %arg1 : i32, i32
  }
}

</mosaic_0001>

<bundles_post_ra>
// kernel: tpu_custom_call.1
= control target key start
LH: loop header
LB: loop body
LE: loop exit
PB: predicated region body
PF: predicated region fallthrough
CT: control target
= control target key end

     0   :  { %6 = vsyncpa [#allocation3], 0  ;;  %s148_s0 = inlined_call_operand.hbm [shape: f32[8,256], index: 0, kind: input, shape index: {}]   ;;  %s149_s1 = inlined_call_operand.hbm [shape: f32[8,256], index: 1, kind: output, shape index: {}]  }
   0x1   :  { %7 = vsyncpa [#allocation4], 0  ;;  %s112_s6 = smov [#allocation2]   ;;  %s64_s10 = scalar_lea.hbm %s148_s0, 256 }
   0x2   :  { %s14_s7 = sshll.u32 %s112_s6, 4  ;;  %p65_p0 = scmp.ne.s32.totalorder %s148_s0, %s64_s10  ;;  %s15_s7 = int_to_ptr.vmem [resolvable:$true] %s14_s7 }
   0x3   :  { %p68_p1 = scmp.lt.u32.totalorder %s64_s10, %s148_s0 }
   0x5   :  { %p70_p2 = pnand %p68_p1, %p65_p0 }
   0x7   :  { %73 = shalt.err (!%p70_p2)
}
   0x8   :  { %s74_s15 = scalar_lea.vmem %s15_s7, 256  ;;  %p79_p4 = scmp.lt.s32.totalorder %s15_s7, %s15_s7 }
   0x9   :  { %p75_p3 = scmp.ne.s32.totalorder %s15_s7, %s74_s15  ;;  %p80_p5 = scmp.lt.s32.totalorder %s74_s15, %s74_s15 }
   0xb   :  { %p81_p6 = por %p80_p5, %p79_p4 }
   0xd   :  { %p82_p7 = pnand %p81_p6, %p75_p3 }
   0xf   :  { %85 = shalt.err (!%p82_p7)
}
  0x10   :  { %17 = dma.hbm_to_vmem [thread:$0]  %s148_s0, 256, %s15_s7, [#allocation3]  }
  0x11   :  { %108 = dma.done.wait [#allocation3], 256  }
  0x12   :  { %109 = vsyncadd [#allocation3], 4294967040  ;;  %v21_v0 = vld [vmem:[#allocation2] sm:$0xff]  ;;  %v22_v1 = vld [vmem:[#allocation2 + $0x8] sm:$0xff]  ;;  %s113_s18 = smov [#allocation5]  }
  0x13   :  { %v52_v2 = vmul.f32 -1.442695, %v21_v0  ;;  %v53_v3 = vmul.f32 -1.442695, %v22_v1  ;;  %s43_s19 = sshll.u32 %s113_s18, 4  ;;  %s44_s19 = int_to_ptr.vmem [resolvable:$true] %s43_s19 }
  0x14   :  { %s86_s0 = scalar_lea.vmem %s44_s19, 256  ;;  %p91_p9 = scmp.lt.s32.totalorder %s44_s19, %s44_s19 }
  0x15   :  { %56 = vpow2.f32 %v52_v2  ;;  %p87_p8 = scmp.ne.s32.totalorder %s44_s19, %s86_s0  ;;  %p92_p10 = scmp.lt.s32.totalorder %s86_s0, %s86_s0 }
  0x16   :  { %58 = vpow2.f32 %v53_v3 }
  0x17   :  { %p93_p11 = por %p92_p10, %p91_p9 }
  0x19   :  { %p94_p12 = pnand %p93_p11, %p87_p8 }
  0x1f   :  { %v57_v4 = vpop.eup %56 }
  0x20   :  { %v59_v5 = vpop.eup %58  ;;  %v29_v6 = vadd.f32 1.0, %v57_v4 }
  0x21   :  { %v30_v7 = vadd.f32 1.0, %v59_v5 }
  0x22   :  { %60 = vrcp.f32 %v29_v6 }
  0x23   :  { %62 = vrcp.f32 %v30_v7 }
  0x2c   :  { %v61_v8 = vpop.eup %60 }
  0x2d   :  { %v63_v9 = vpop.eup %62  ;;  %35 = vst [vmem:[#allocation5] sm:$0xff] %v61_v8 }
  0x2e   :  { %36 = vst [vmem:[#allocation5 + $0x8] sm:$0xff] %v63_v9 }
  0x2f   :  { %97 = shalt.err (!%p94_p12)
}
  0x30   :  { %s98_s22 = scalar_lea.hbm %s149_s1, 256 }
  0x31   :  { %p99_p13 = scmp.ne.s32.totalorder %s149_s1, %s98_s22  ;;  %p102_p0 = scmp.lt.u32.totalorder %s98_s22, %s149_s1 }
  0x33   :  { %p104_p1 = pnand %p102_p0, %p99_p13 }
  0x35   :  { %107 = shalt.err (!%p104_p1)
}
  0x36   :  { %46 = dma.vmem_to_hbm [thread:$0]  %s44_s19, 256, %s149_s1, [#allocation4]  }
  0x37   :  { %110 = dma.done.wait [#allocation4], 256  }
  0x38   :  { %111 = vsyncadd [#allocation4], 4294967040 }
  0x39   :  { %50 = vsyncpa [#allocation3], 1 }
  0x3a   :  { %51 = vsyncpa [#allocation4], 1 }

</bundles_post_ra>
